<compile_context>
chip_gen: v7x
topology: tpu7x:2x2x1
jax: 0.10.0
libtpu: 0.0.40
codegen_flags: <defaults>
</compile_context>

<pallas_src>
import functools

import jax
import jax.numpy as jnp
from jax import lax
from jax.experimental import pallas as pl
from jax.experimental.pallas import tpu as pltpu


def _round_up(x, m):
    return (x + m - 1) // m * m


def _default_compute_dtype():
    """bf16 dot+tanh path on v6e/v7x; f32 on v5e and older (no bf16 VPU/EUP)."""
    try:
        kind = jax.devices()[0].device_kind.lower()
    except Exception:
        return jnp.float32
    for old in ("v2", "v3", "v4", "v5"):
        if old in kind:
            return jnp.float32
    return jnp.bfloat16


def _mlp_value_kernel(x_ref,            # [batch_tile, obs_dim]   (natural layout)
                      w1_ref, b1_ref,   # [H1, obs_dim] f32, [H1, 1] f32
                      w2_ref, b2_ref,   # [H2, H1] cdtype,   [H2, 1] f32
                      w3_ref, b3_ref,   # [H3, H2] cdtype,   [H3, 1] f32
                      w4_ref, b4_ref,   # [H3, 1] f32,       [1, 1]  f32
                      o_ref,            # [1, batch_tile] f32
                      *, chunk, n_chunks, compute_dtype):
    # Lane-chunk the batch tile so each layer's live activations fit the
    # 64-vreg register file (avoids VMEM spill/reload of h between layers).
    @pl.loop(0, n_chunks)
    def _(c):
        col = pl.multiple_of(c * chunk, 128)
        # obs chunk in natural [chunk, obs_dim] layout; contract over obs_dim of
        # BOTH operands so the result is feature-major [H1, chunk] (batch on
        # lanes).  Mosaic inserts the small in-VMEM transpose itself.
        x = x_ref[pl.ds(col, chunk), :]                      # f32
        h = lax.dot_general(w1_ref[...], x, (((1,), (1,)), ((), ())),
                            preferred_element_type=jnp.float32)
        h = jnp.tanh((h + b1_ref[...]).astype(compute_dtype))
        # Layer 2: [H2, H1] @ [H1, chunk] -> [H2, chunk]
        h = jnp.dot(w2_ref[...], h, preferred_element_type=jnp.float32)
        h = jnp.tanh((h + b2_ref[...]).astype(compute_dtype))
        # Layer 3: [H3, H2] @ [H2, chunk] -> [H3, chunk]
        h = jnp.dot(w3_ref[...], h, preferred_element_type=jnp.float32)
        h = jnp.tanh((h + b3_ref[...]).astype(compute_dtype))
        # Final 25 -> 1: VPU multiply + sublane (feature) reduce, f32.
        v = jnp.sum(h.astype(jnp.float32) * w4_ref[...], axis=0, keepdims=True)
        v = v + b4_ref[...]
        o_ref[:, pl.ds(col, chunk)] = v.astype(o_ref.dtype)  # lane-dense store


def mlp_value_function(obs, params, *, batch_tile=1024, compute_dtype=None):
    """obs: [B, obs_dim] f32, params in PyTorch layout (W:[out,in], b:[out]).
    Returns [B] f32 (matches .squeeze(-1)).

    compute_dtype=None -> bf16 on v6e/v7x (tolerance ~1e-2), f32 elsewhere
    (matches the reference to ~1e-5)."""
    (w1, b1), (w2, b2), (w3, b3), (w4, b4) = params
    B, obs_dim = obs.shape

    if compute_dtype is None:
        compute_dtype = _default_compute_dtype()
    compute_dtype = jnp.dtype(compute_dtype)
    use_bf16 = compute_dtype == jnp.bfloat16

    # Feature padding: 16-multiples for the bf16 (16,128) min tile, else 8.
    # Zero padding is mathematically inert (zero rows/cols, tanh(0)=0).
    sub = 16 if use_bf16 else 8
    H1 = _round_up(w1.shape[0], sub)   # 100 -> 104 / 112
    H2 = _round_up(w2.shape[0], sub)   # 50  -> 56  / 64
    H3 = _round_up(w3.shape[0], sub)   # 25  -> 32  / 32

    def pad_w(w, out_p, in_p):
        o, i = w.shape
        return jnp.pad(w, ((0, out_p - o), (0, in_p - i)))

    def pad_b(b, out_p):
        return jnp.pad(b.reshape(-1, 1), ((0, out_p - b.shape[0]), (0, 0)))

    # Layer-1 weights stay f32 (tiny K=obs_dim; keeps obs unquantized);
    # layers 2/3 use compute_dtype; biases / final vector stay f32.
    w1p = pad_w(w1, H1, obs_dim).astype(jnp.float32)        # [H1, obs_dim]
    w2p = pad_w(w2, H2, H1).astype(compute_dtype)           # [H2, H1]
    w3p = pad_w(w3, H3, H2).astype(compute_dtype)           # [H3, H2]
    w4p = pad_w(w4, 1, H3).T.astype(jnp.float32)            # [H3, 1]
    b1p = pad_b(b1, H1).astype(jnp.float32)
    b2p = pad_b(b2, H2).astype(jnp.float32)
    b3p = pad_b(b3, H3).astype(jnp.float32)
    b4p = b4.reshape(1, 1).astype(jnp.float32)

    # Batch tiling: lane-dense, large tiles; guarantee >= 2 grid steps for
    # medium/large B so both v7x TensorCores get work via the parallel axis.
    batch_tile = max(128, min(_round_up(batch_tile, 128), _round_up(B, 128)))
    if B >= 256:
        batch_tile = min(batch_tile,
                         _round_up(pl.cdiv(_round_up(B, 128), 2), 128))
    B_pad = _round_up(B, batch_tile)

    # obs stays in its natural [B, obs_dim] layout — no transpose / feature pad
    # (no extra HBM pass).  Only ragged batch rows are zero-padded.
    obs_in = obs if B_pad == B else jnp.pad(obs, ((0, B_pad - B), (0, 0)))

    # In-kernel lane-chunk size (multiple of 128, divides batch_tile).
    target = 512 if use_bf16 else 256
    chunk = 128
    while chunk * 2 <= target and batch_tile % (chunk * 2) == 0:
        chunk *= 2
    n_chunks = batch_tile // chunk

    def full_spec(shape):
        # Index-invariant (constant index map) -> fetched once, stays resident;
        # Pallas does not re-DMA unchanged blocks across grid steps.
        return pl.BlockSpec(shape, lambda i: (0, 0))

    kernel = functools.partial(_mlp_value_kernel, chunk=chunk,
                               n_chunks=n_chunks, compute_dtype=compute_dtype)

    grid = (B_pad // batch_tile,)
    out = pl.pallas_call(
        kernel,
        out_shape=jax.ShapeDtypeStruct((1, B_pad), jnp.float32),
        grid_spec=pltpu.PrefetchScalarGridSpec(
            num_scalar_prefetch=0,
            grid=grid,
            in_specs=[
                # obs tile in natural layout: last dim = full array dim (legal
                # even though obs_dim is not a multiple of 128).
                pl.BlockSpec((batch_tile, obs_dim), lambda i: (i, 0)),
                full_spec(w1p.shape), full_spec(b1p.shape),
                full_spec(w2p.shape), full_spec(b2p.shape),
                full_spec(w3p.shape), full_spec(b3p.shape),
                full_spec(w4p.shape), full_spec(b4p.shape),
            ],
            out_specs=pl.BlockSpec((1, batch_tile), lambda i: (0, i)),
        ),
        compiler_params=pltpu.CompilerParams(
            dimension_semantics=("parallel",)),
    )(obs_in, w1p, b1p, w2p, b2p, w3p, b3p, w4p, b4p)
    return out[0, :B]   # squeeze(-1) + drop batch padding


def init_params(key, obs_dim):
    """PyTorch-default-like Linear init (uniform +/- 1/sqrt(fan_in)).
    PyTorch layout: W [out, in], b [out]."""
    dims = [obs_dim, 100, 50, 25, 1]
    params = []
    for fan_in, fan_out in zip(dims[:-1], dims[1:]):
        key, kw, kb = jax.random.split(key, 3)
        bound = 1.0 / jnp.sqrt(jnp.float32(fan_in))
        w = jax.random.uniform(kw, (fan_out, fan_in), jnp.float32, -bound, bound)
        b = jax.random.uniform(kb, (fan_out,), jnp.float32, -bound, bound)
        params.append((w, b))
    return params


def _reference(obs, params):
    h = obs
    for i, (w, b) in enumerate(params):
        h = h @ w.T + b
        if i < len(params) - 1:
            h = jnp.tanh(h)
    return h[:, 0]


if __name__ == "__main__":
    key = jax.random.PRNGKey(0)
    k_obs, k_params = jax.random.split(key)

    # Small ragged batch: exercises batch padding, single grid step.
    B, obs_dim = 10, 17
    obs = jax.random.normal(k_obs, (B, obs_dim), dtype=jnp.float32)
    params = init_params(k_params, obs_dim)
    ref = _reference(obs, params)

    value = jax.block_until_ready(
        mlp_value_function(obs, params, compute_dtype=jnp.float32))
    assert value.shape == (B,), value.shape
    assert jnp.allclose(value, ref, atol=1e-5, rtol=1e-5), (value, ref)

    # Larger ragged batch: exercises >= 2 grid steps and the in-kernel
    # lane-chunk loop (n_chunks > 1) on the f32 path.
    B2 = 1000
    k_obs2, _ = jax.random.split(k_obs)
    obs2 = jax.random.normal(k_obs2, (B2, obs_dim), dtype=jnp.float32)
    ref2 = _reference(obs2, params)
    value2 = jax.block_until_ready(
        mlp_value_function(obs2, params, compute_dtype=jnp.float32))
    assert value2.shape == (B2,), value2.shape
    assert jnp.allclose(value2, ref2, atol=1e-5, rtol=1e-5)

    # bf16 dot+tanh path (default on v6e/v7x) with a looser tolerance.
    if _default_compute_dtype() == jnp.bfloat16:
        value_bf16 = jax.block_until_ready(mlp_value_function(obs, params))
        assert value_bf16.shape == (B,)
        assert jnp.allclose(value_bf16, ref, atol=5e-2, rtol=5e-2), (value_bf16, ref)

    print("KERNEL_OK")
</pallas_src>

<mosaic_0001>
module attributes {stable_mosaic.version = 11 : i64} {
  func.func @_mlp_value_kernel(%arg0: i32, %arg1: memref<128x17xf32, #tpu.memory_space<vmem>>, %arg2: memref<104x17xf32, #tpu.memory_space<vmem>>, %arg3: memref<104x1xf32, #tpu.memory_space<vmem>>, %arg4: memref<56x104xf32, #tpu.memory_space<vmem>>, %arg5: memref<56x1xf32, #tpu.memory_space<vmem>>, %arg6: memref<32x56xf32, #tpu.memory_space<vmem>>, %arg7: memref<32x1xf32, #tpu.memory_space<vmem>>, %arg8: memref<32x1xf32, #tpu.memory_space<vmem>>, %arg9: memref<1x1xf32, #tpu.memory_space<vmem>>, %arg10: memref<1x128xf32, #tpu.memory_space<vmem>>) attributes {dimension_semantics = [#tpu.dimension_semantics<parallel>], iteration_bounds = array<i64: 1>, scalar_prefetch = 0 : i64, scratch_operands = 0 : i64, tpu.core_type = #tpu.core_type<tc>, window_params = [{transform_indices = @transform_0, window_bounds = array<i64: 128, 17>}, {pipeline_mode = #tpu.pipeline_mode<synchronous>, transform_indices = @transform_1, window_bounds = array<i64: 104, 17>}, {pipeline_mode = #tpu.pipeline_mode<synchronous>, transform_indices = @transform_2, window_bounds = array<i64: 104, 1>}, {pipeline_mode = #tpu.pipeline_mode<synchronous>, transform_indices = @transform_3, window_bounds = array<i64: 56, 104>}, {pipeline_mode = #tpu.pipeline_mode<synchronous>, transform_indices = @transform_4, window_bounds = array<i64: 56, 1>}, {pipeline_mode = #tpu.pipeline_mode<synchronous>, transform_indices = @transform_5, window_bounds = array<i64: 32, 56>}, {pipeline_mode = #tpu.pipeline_mode<synchronous>, transform_indices = @transform_6, window_bounds = array<i64: 32, 1>}, {pipeline_mode = #tpu.pipeline_mode<synchronous>, transform_indices = @transform_7, window_bounds = array<i64: 32, 1>}, {pipeline_mode = #tpu.pipeline_mode<synchronous>, transform_indices = @transform_8, window_bounds = array<i64: 1, 1>}, {transform_indices = @transform_9, window_bounds = array<i64: 1, 128>}]} {
    %c0_i32 = arith.constant 0 : i32
    %c1_i32 = arith.constant 1 : i32
    %0 = arith.muli %c0_i32, %c1_i32 : i32
    %c0_i32_0 = arith.constant 0 : i32
    %1 = arith.addi %c0_i32_0, %0 : i32
    %c128_i32 = arith.constant 128 : i32
    %2 = arith.muli %1, %c128_i32 : i32
    %3 = tpu.assume_multiple %2, 128 : i32
    %4 = arith.index_cast %3 : i32 to index
    %c0 = arith.constant 0 : index
    %5 = vector.load %arg1[%4, %c0] : memref<128x17xf32, #tpu.memory_space<vmem>>, vector<128x17xf32>
    %c0_1 = arith.constant 0 : index
    %c0_2 = arith.constant 0 : index
    %6 = vector.load %arg2[%c0_1, %c0_2] : memref<104x17xf32, #tpu.memory_space<vmem>>, vector<104x17xf32>
    %cst = arith.constant dense<0.000000e+00> : vector<104x128xf32>
    %7 = tpu.matmul %6, %5, %cst {dimension_numbers = #tpu.dot_dimension_numbers<[1], [1], [0], [0], [0, 0, 1, 0], [], []>} : vector<104x17xf32>, vector<128x17xf32>, vector<104x128xf32> -> vector<104x128xf32>
    %c0_3 = arith.constant 0 : index
    %c0_4 = arith.constant 0 : index
    %8 = vector.load %arg3[%c0_3, %c0_4] : memref<104x1xf32, #tpu.memory_space<vmem>>, vector<104x1xf32>
    %9 = vector.broadcast %8 : vector<104x1xf32> to vector<104x128xf32>
    %10 = arith.addf %7, %9 : vector<104x128xf32>
    %11 = math.tanh %10 : vector<104x128xf32>
    %c0_5 = arith.constant 0 : index
    %c0_6 = arith.constant 0 : index
    %12 = vector.load %arg4[%c0_5, %c0_6] : memref<56x104xf32, #tpu.memory_space<vmem>>, vector<56x104xf32>
    %cst_7 = arith.constant dense<0.000000e+00> : vector<56x128xf32>
    %13 = tpu.matmul %12, %11, %cst_7 {dimension_numbers = #tpu.dot_dimension_numbers<[1], [0], [0], [1], [0, 0, 1, 1], [], []>} : vector<56x104xf32>, vector<104x128xf32>, vector<56x128xf32> -> vector<56x128xf32>
    %c0_8 = arith.constant 0 : index
    %c0_9 = arith.constant 0 : index
    %14 = vector.load %arg5[%c0_8, %c0_9] : memref<56x1xf32, #tpu.memory_space<vmem>>, vector<56x1xf32>
    %15 = vector.broadcast %14 : vector<56x1xf32> to vector<56x128xf32>
    %16 = arith.addf %13, %15 : vector<56x128xf32>
    %17 = math.tanh %16 : vector<56x128xf32>
    %c0_10 = arith.constant 0 : index
    %c0_11 = arith.constant 0 : index
    %18 = vector.load %arg6[%c0_10, %c0_11] : memref<32x56xf32, #tpu.memory_space<vmem>>, vector<32x56xf32>
    %cst_12 = arith.constant dense<0.000000e+00> : vector<32x128xf32>
    %19 = tpu.matmul %18, %17, %cst_12 {dimension_numbers = #tpu.dot_dimension_numbers<[1], [0], [0], [1], [0, 0, 1, 1], [], []>} : vector<32x56xf32>, vector<56x128xf32>, vector<32x128xf32> -> vector<32x128xf32>
    %c0_13 = arith.constant 0 : index
    %c0_14 = arith.constant 0 : index
    %20 = vector.load %arg7[%c0_13, %c0_14] : memref<32x1xf32, #tpu.memory_space<vmem>>, vector<32x1xf32>
    %21 = vector.broadcast %20 : vector<32x1xf32> to vector<32x128xf32>
    %22 = arith.addf %19, %21 : vector<32x128xf32>
    %23 = math.tanh %22 : vector<32x128xf32>
    %c0_15 = arith.constant 0 : index
    %c0_16 = arith.constant 0 : index
    %24 = vector.load %arg8[%c0_15, %c0_16] : memref<32x1xf32, #tpu.memory_space<vmem>>, vector<32x1xf32>
    %25 = vector.broadcast %24 : vector<32x1xf32> to vector<32x128xf32>
    %26 = arith.mulf %23, %25 : vector<32x128xf32>
    %cst_17 = arith.constant dense<0.000000e+00> : vector<128xf32>
    %27 = vector.multi_reduction <add>, %26, %cst_17 [0] : vector<32x128xf32> to vector<128xf32>
    %28 = vector.shape_cast %27 : vector<128xf32> to vector<1x128xf32>
    %c0_18 = arith.constant 0 : index
    %c0_19 = arith.constant 0 : index
    %29 = vector.load %arg9[%c0_18, %c0_19] : memref<1x1xf32, #tpu.memory_space<vmem>>, vector<1x1xf32>
    %30 = vector.broadcast %29 : vector<1x1xf32> to vector<1x128xf32>
    %31 = arith.addf %28, %30 : vector<1x128xf32>
    %c0_20 = arith.constant 0 : index
    %32 = arith.index_cast %3 : i32 to index
    %33 = vector.load %arg10[%c0_20, %32] : memref<1x128xf32, #tpu.memory_space<vmem>>, vector<1x128xf32>
    tpu.vector_store %arg10[%c0_20, %32], %31 {strides = array<i32>} : memref<1x128xf32, #tpu.memory_space<vmem>>, vector<1x128xf32>,
    %c1_i32_21 = arith.constant 1 : i32
    return
  }
  func.func @transform_0(%arg0: i32) -> (i32, i32) {
    %c0_i32 = arith.constant 0 : i32
    %c0_i32_0 = arith.constant 0 : i32
    return %arg0, %c0_i32 : i32, i32
  }
  func.func @transform_1(%arg0: i32) -> (i32, i32) {
    %c0_i32 = arith.constant 0 : i32
    %c0_i32_0 = arith.constant 0 : i32
    %c0_i32_1 = arith.constant 0 : i32
    return %c0_i32, %c0_i32_0 : i32, i32
  }
  func.func @transform_2(%arg0: i32) -> (i32, i32) {
    %c0_i32 = arith.constant 0 : i32
    %c0_i32_0 = arith.constant 0 : i32
    %c0_i32_1 = arith.constant 0 : i32
    return %c0_i32, %c0_i32_0 : i32, i32
  }
  func.func @transform_3(%arg0: i32) -> (i32, i32) {
    %c0_i32 = arith.constant 0 : i32
    %c0_i32_0 = arith.constant 0 : i32
    %c0_i32_1 = arith.constant 0 : i32
    return %c0_i32, %c0_i32_0 : i32, i32
  }
  func.func @transform_4(%arg0: i32) -> (i32, i32) {
    %c0_i32 = arith.constant 0 : i32
    %c0_i32_0 = arith.constant 0 : i32
    %c0_i32_1 = arith.constant 0 : i32
    return %c0_i32, %c0_i32_0 : i32, i32
  }
  func.func @transform_5(%arg0: i32) -> (i32, i32) {
    %c0_i32 = arith.constant 0 : i32
    %c0_i32_0 = arith.constant 0 : i32
    %c0_i32_1 = arith.constant 0 : i32
    return %c0_i32, %c0_i32_0 : i32, i32
  }
  func.func @transform_6(%arg0: i32) -> (i32, i32) {
    %c0_i32 = arith.constant 0 : i32
    %c0_i32_0 = arith.constant 0 : i32
    %c0_i32_1 = arith.constant 0 : i32
    return %c0_i32, %c0_i32_0 : i32, i32
  }
  func.func @transform_7(%arg0: i32) -> (i32, i32) {
    %c0_i32 = arith.constant 0 : i32
    %c0_i32_0 = arith.constant 0 : i32
    %c0_i32_1 = arith.constant 0 : i32
    return %c0_i32, %c0_i32_0 : i32, i32
  }
  func.func @transform_8(%arg0: i32) -> (i32, i32) {
    %c0_i32 = arith.constant 0 : i32
    %c0_i32_0 = arith.constant 0 : i32
    %c0_i32_1 = arith.constant 0 : i32
    return %c0_i32, %c0_i32_0 : i32, i32
  }
  func.func @transform_9(%arg0: i32) -> (i32, i32) {
    %c0_i32 = arith.constant 0 : i32
    %c0_i32_0 = arith.constant 0 : i32
    return %c0_i32, %arg0 : i32, i32
  }
}

</mosaic_0001>

<bundles_post_ra>
// kernel: tpu_custom_call.1
= control target key start
LH: loop header
LB: loop body
LE: loop exit
PB: predicated region body
PF: predicated region fallthrough
CT: control target
= control target key end

     0   :  { %s1498_s0 = inlined_call_operand.vmem [shape: f32[128,17], index: 0, kind: input, shape index: {}]   ;;  %s1499_s1 = inlined_call_operand.vmem [shape: f32[104,17], index: 1, kind: input, shape index: {}]   ;;  %s1500_s2 = inlined_call_operand.vmem [shape: f32[104,1], index: 2, kind: input, shape index: {}]   ;;  %s1501_s3 = inlined_call_operand.vmem [shape: f32[56,104], index: 3, kind: input, shape index: {}]   ;;  %s1502_s4 = inlined_call_operand.vmem [shape: f32[56,1], index: 4, kind: input, shape index: {}]   ;;  %s1503_s5 = inlined_call_operand.vmem [shape: f32[32,56], index: 5, kind: input, shape index: {}]   ;;  %s1504_s6 = inlined_call_operand.vmem [shape: f32[32,1], index: 6, kind: input, shape index: {}]   ;;  %s1505_s7 = inlined_call_operand.vmem [shape: f32[32,1], index: 7, kind: input, shape index: {}]   ;;  %s1506_s8 = inlined_call_operand.<no memory space> [shape: f32[1,1], index: 8, kind: input, shape index: {}]   ;;  %s1507_s9 = inlined_call_operand.hbm [shape: f32[1,128], index: 9, kind: output, shape index: {}]  }
   0x1   :  { %v14_v0 = vstv %s1506_s8 }
   0x2   :  { %15 = vst [vmem:[#allocation2] sm:$0x1] %v14_v0 }
   0x3   :  { %v35_v1 = vld [vmem:[%s1498_s0] sm:$0xff]  ;;  %v36_v2 = vld [vmem:[%s1498_s0 + $0x8] sm:$0xff]  ;;  %vm142_vm0 = vcmask 138240   ;;  %v1123_v3 = vmov 0.0|0.0   ;;  %vm1124_vm2 = vmmov 0   ;;  %v1125_v6 = vmov 0.0  }
   0x4   :  { %982 = vmatprep.subr.bf16.mxu0 %v1123_v3  ;;  %v983_v4 = vpack.c.bf16 %v36_v2, %v35_v1  ;;  %vm1190_vm1 = vmpackc.low %vm142_vm0, %vm142_vm0  ;;  %1014 = vmatprep.subr.bf16.mxu1 %v1123_v3  ;;  %v1126_v7 = vmov 0   ;;  %v37_v8 = vld [vmem:[%s1498_s0 + $0x10] sm:$0xff]  ;;  %v38_v9 = vld [vmem:[%s1498_s0 + $0x18] sm:$0xff] }
   0x5   :  { %876 = vmatprep.mubr.msk.f32.mxu0 %vm1124_vm2, %v1125_v6  ;;  %1049 = vset.pattern.permute.xlu0 %v1126_v7  ;;  %v987_v10 = vpack.c.bf16 %v38_v9, %v37_v8  ;;  %v64_v11 = vld [vmem:[%s1500_s2] sm:$0xff]  ;;  %v66_v12 = vld [vmem:[%s1500_s2 + $0x10] sm:$0xff]  ;;  %v65_v13 = vld [vmem:[%s1500_s2 + $0x8] sm:$0xff] }
   0x6   :  { %985 = vmatpush3.bf16.xpose.msk.msra.mxu0 %vm1190_vm1, %v983_v4  ;;  %1050 = vset.pattern.permute.xlu1 %v1126_v7  ;;  %v39_v14 = vld [vmem:[%s1498_s0 + $0x20] sm:$0xff]  ;;  %v40_v15 = vld [vmem:[%s1498_s0 + $0x28] sm:$0xff]  ;;  %v67_v16 = vld [vmem:[%s1500_s2 + $0x18] sm:$0xff] }
   0x7   :  { %986 = vmatprep.subr.bf16.mxu0 %v1123_v3  ;;  %941 = vmatprep.mubr.msk.f32.mxu1 %vm1124_vm2, %v1125_v6  ;;  %v991_v17 = vpack.c.bf16 %v40_v15, %v39_v14  ;;  %v68_v18 = vld [vmem:[%s1500_s2 + $0x20] sm:$0xff]  ;;  %v69_v19 = vld [vmem:[%s1500_s2 + $0x28] sm:$0xff]  ;;  %v70_v20 = vld [vmem:[%s1500_s2 + $0x30] sm:$0xff] }
   0x8   :  { %79 = vperm.xlu0 %1049, %v64_v11   ;;  %89 = vperm.xlu1 %1050, %v66_v12  }
   0xc   :  { %84 = vperm.xlu0 %1049, %v65_v13   ;;  %94 = vperm.xlu1 %1050, %v67_v16  }
   0xe   :  { %989 = vmatpush3.bf16.xpose.msk.msra.mxu0 %vm1190_vm1, %v987_v10 }
   0xf   :  { %990 = vmatprep.subr.bf16.mxu0 %v1123_v3 }
  0x10   :  { %99 = vperm.xlu0 %1049, %v68_v18   ;;  %104 = vperm.xlu1 %1050, %v69_v19  }
  0x16   :  { %993 = vmatpush3.bf16.xpose.msk.msra.mxu0 %vm1190_vm1, %v991_v17 }
  0x17   :  { %16 = vsyncpa [#allocation4], 0  ;;  %994 = vmatprep.subr.bf16.mxu0 %v1123_v3  ;;  %v41_v21 = vld [vmem:[%s1498_s0 + $0x30] sm:$0xff]  ;;  %v42_v22 = vld [vmem:[%s1498_s0 + $0x38] sm:$0xff]  ;;  %109 = vperm.xlu0 %1049, %v70_v20   ;;  %vm422_vm3 = vcmask 850944   ;;  %vm579_vm4 = vcmask 457728  }
  0x18   :  { %v71_v23 = vld [vmem:[%s1500_s2 + $0x38] sm:$0xff]  ;;  %v995_v24 = vpack.c.bf16 %v42_v22, %v41_v21  ;;  %v72_v25 = vld [vmem:[%s1500_s2 + $0x40] sm:$0xff]  ;;  %v73_v26 = vld [vmem:[%s1500_s2 + $0x48] sm:$0xff] }
  0x19   :  { %114 = vperm.xlu1 %1050, %v71_v23   ;;  %v74_v27 = vld [vmem:[%s1500_s2 + $0x50] sm:$0xff]  ;;  %v43_v28 = vld [vmem:[%s1498_s0 + $0x40] sm:$0xff]  ;;  %v44_v29 = vld [vmem:[%s1498_s0 + $0x48] sm:$0xff] }
  0x1a   :  { %v75_v30 = vld [vmem:[%s1500_s2 + $0x58] sm:$0xff]  ;;  %v999_v31 = vpack.c.bf16 %v44_v29, %v43_v28  ;;  %v76_v32 = vld [vmem:[%s1500_s2 + $0x60] sm:$0xff]  ;;  %v381_v34 = vld [vmem:[%s1502_s4 + $0x8] sm:$0xff] }
  0x1b   :  { %119 = vperm.xlu0 %1049, %v72_v25   ;;  %v380_v33 = vld [vmem:[%s1502_s4] sm:$0xff]  ;;  %v45_v35 = vld [vmem:[%s1498_s0 + $0x50] sm:$0xff]  ;;  %v46_v36 = vld [vmem:[%s1498_s0 + $0x58] sm:$0xff] }
  0x1c   :  { %v382_v37 = vld [vmem:[%s1502_s4 + $0x10] sm:$0xff]  ;;  %v1003_v38 = vpack.c.bf16 %v46_v36, %v45_v35  ;;  %v383_v39 = vld [vmem:[%s1502_s4 + $0x18] sm:$0xff]  ;;  %v384_v40 = vld [vmem:[%s1502_s4 + $0x20] sm:$0xff] }
  0x1d   :  { %124 = vperm.xlu1 %1050, %v73_v26   ;;  %v385_v41 = vld [vmem:[%s1502_s4 + $0x28] sm:$0xff]  ;;  %v47_v42 = vld [vmem:[%s1498_s0 + $0x60] sm:$0xff]  ;;  %v386_v44 = vld [vmem:[%s1502_s4 + $0x30] sm:$0xff] }
  0x1e   :  { %997 = vmatpush3.bf16.xpose.msk.msra.mxu0 %vm1190_vm1, %v995_v24  ;;  %v48_v43 = vld [vmem:[%s1498_s0 + $0x68] sm:$0xff]  ;;  %v555_v46 = vld [vmem:[%s1504_s6] sm:$0xff]  ;;  %v557_v48 = vld [vmem:[%s1504_s6 + $0x10] sm:$0xff] }
  0x1f   :  { %998 = vmatprep.subr.bf16.mxu0 %v1123_v3  ;;  %129 = vperm.xlu0 %1049, %v74_v27   ;;  %v1007_v45 = vpack.c.bf16 %v48_v43, %v47_v42  ;;  %v556_v47 = vld [vmem:[%s1504_s6 + $0x8] sm:$0xff]  ;;  %v49_v49 = vld [vmem:[%s1498_s0 + $0x70] sm:$0xff]  ;;  %v50_v50 = vld [vmem:[%s1498_s0 + $0x78] sm:$0xff] }
  0x20   :  { %v558_v51 = vld [vmem:[%s1504_s6 + $0x18] sm:$0xff]  ;;  %v1011_v52 = vpack.c.bf16 %v50_v50, %v49_v49  ;;  %v681_v53 = vld [vmem:[%s1505_s7] sm:$0xff]  ;;  %v682_v54 = vld [vmem:[%s1505_s7 + $0x8] sm:$0xff] }
  0x21   :  { %134 = vperm.xlu1 %1050, %v75_v30   ;;  %v683_v55 = vld [vmem:[%s1505_s7 + $0x10] sm:$0xff]  ;;  %v684_v56 = vld [vmem:[%s1505_s7 + $0x18] sm:$0xff]  ;;  %v51_v57 = vld [vmem:[%s1499_s1] sm:$0xff] }
  0x22   :  { %v718_v58 = vld [vmem:[#allocation2] sm:$0x1]  ;;  %v52_v59 = vld [vmem:[%s1499_s1 + $0x8] sm:$0xff]  ;;  %v53_v60 = vld [vmem:[%s1499_s1 + $0x10] sm:$0xff] }
  0x23   :  { %139 = vperm.xlu0 %1049, %v76_v32   ;;  %v54_v61 = vld [vmem:[%s1499_s1 + $0x18] sm:$0xff]  ;;  %v55_v62 = vld [vmem:[%s1499_s1 + $0x20] sm:$0xff]  ;;  %v56_v63 = vld [vmem:[%s1499_s1 + $0x28] sm:$0xff] }
  0x24   :  { %v57_v0 = vld [vmem:[%s1499_s1 + $0x30] sm:$0xff]  ;;  %v58_v1 = vld [vmem:[%s1499_s1 + $0x38] sm:$0xff]  ;;  %v59_v2 = vld [vmem:[%s1499_s1 + $0x40] sm:$0xff] }
  0x25   :  { %389 = vperm.xlu1 %1050, %v380_v33   ;;  %v60_v4 = vld [vmem:[%s1499_s1 + $0x48] sm:$0xff]  ;;  %v61_v5 = vld [vmem:[%s1499_s1 + $0x50] sm:$0xff]  ;;  %v62_v7 = vld [vmem:[%s1499_s1 + $0x58] sm:$0xff] }
  0x26   :  { %1001 = vmatpush3.bf16.xpose.msk.msra.mxu0 %vm1190_vm1, %v999_v31  ;;  %v63_v8 = vld [vmem:[%s1499_s1 + $0x60] sm:$0xff] }
  0x27   :  { %1002 = vmatprep.subr.bf16.mxu0 %v1123_v3  ;;  %394 = vperm.xlu0 %1049, %v381_v34  }
  0x29   :  { %399 = vperm.xlu1 %1050, %v382_v37  }
  0x2b   :  { %404 = vperm.xlu0 %1049, %v383_v39  }
  0x2d   :  { %409 = vperm.xlu1 %1050, %v384_v40  }
  0x2e   :  { %1005 = vmatpush3.bf16.xpose.msk.msra.mxu0 %vm1190_vm1, %v1003_v38 }
  0x2f   :  { %1006 = vmatprep.subr.bf16.mxu0 %v1123_v3  ;;  %414 = vperm.xlu0 %1049, %v385_v41  }
  0x31   :  { %419 = vperm.xlu1 %1050, %v386_v44  }
  0x33   :  { %561 = vperm.xlu0 %1049, %v555_v46  }
  0x35   :  { %566 = vperm.xlu1 %1050, %v556_v47  }
  0x36   :  { %1009 = vmatpush3.bf16.xpose.msk.msra.mxu0 %vm1190_vm1, %v1007_v45 }
  0x37   :  { %1010 = vmatprep.subr.bf16.mxu0 %v1123_v3  ;;  %571 = vperm.xlu0 %1049, %v557_v48  }
  0x39   :  { %576 = vperm.xlu1 %1050, %v558_v51  }
  0x3b   :  { %687 = vperm.xlu0 %1049, %v681_v53  }
  0x3d   :  { %692 = vperm.xlu1 %1050, %v682_v54  }
  0x3e   :  { %1013 = vmatpush3.bf16.xpose.msk.msra.mxu0 %vm1190_vm1, %v1011_v52 }
  0x3f   :  { %697 = vperm.xlu0 %1049, %v683_v55  }
  0x41   :  { %702 = vperm.xlu1 %1050, %v684_v56  }
  0x43   :  { %721 = vperm.xlu0 %1049, %v718_v58  }
  0x45   :  { %877 = vmatmul.mubr.msk.f32.vlgmr.msra.gmra.mrb[0].mxu0 %vm142_vm0, %v51_v57 }
  0x46   :  { %879 = vmatprep.mubr.msk.f32.mxu0 %vm1124_vm2, %v1125_v6 }
  0x49   :  { %880 = vmatmul.mubr.msk.f32.gmra.mrb[2].mxu0 %vm142_vm0, %v52_v59 }
  0x4a   :  { %882 = vmatprep.mubr.msk.f32.mxu0 %vm1124_vm2, %v1125_v6 }
  0x4d   :  { %883 = vmatmul.mubr.msk.f32.gmra.mrb[4].mxu0 %vm142_vm0, %v53_v60 }
  0x4e   :  { %885 = vmatprep.mubr.msk.f32.mxu0 %vm1124_vm2, %v1125_v6 }
  0x51   :  { %886 = vmatmul.mubr.msk.f32.gmra.mrb[6].mxu0 %vm142_vm0, %v54_v61 }
  0x52   :  { %888 = vmatprep.mubr.msk.f32.mxu0 %vm1124_vm2, %v1125_v6 }
  0x55   :  { %889 = vmatmul.mubr.msk.f32.gmra.mrb[8].mxu0 %vm142_vm0, %v55_v62 }
  0x56   :  { %891 = vmatprep.mubr.msk.f32.mxu0 %vm1124_vm2, %v1125_v6 }
  0x59   :  { %892 = vmatmul.mubr.msk.f32.gmra.mrb[10].mxu0 %vm142_vm0, %v56_v63 }
  0x5a   :  { %894 = vmatprep.mubr.msk.f32.mxu0 %vm1124_vm2, %v1125_v6 }
  0x5d   :  { %895 = vmatmul.mubr.msk.f32.gmra.mrb[12].mxu0 %vm142_vm0, %v57_v0 }
  0x5e   :  { %897 = vmatprep.mubr.msk.f32.mxu0 %vm1124_vm2, %v1125_v6 }
  0x61   :  { %898 = vmatmul.mubr.msk.f32.gmra.mrb[14].mxu0 %vm142_vm0, %v58_v1 }
  0x62   :  { %900 = vmatprep.mubr.msk.f32.mxu0 %vm1124_vm2, %v1125_v6 }
  0x65   :  { %901 = vmatmul.mubr.msk.f32.gmra.mrb[16].mxu0 %vm142_vm0, %v59_v2 }
  0x66   :  { %903 = vmatprep.mubr.msk.f32.mxu0 %vm1124_vm2, %v1125_v6 }
  0x69   :  { %904 = vmatmul.mubr.msk.f32.gmra.mrb[18].mxu0 %vm142_vm0, %v60_v4 }
  0x6a   :  { %906 = vmatprep.mubr.msk.f32.mxu0 %vm1124_vm2, %v1125_v6 }
  0x6d   :  { %907 = vmatmul.mubr.msk.f32.gmra.mrb[20].mxu0 %vm142_vm0, %v61_v5 }
  0x6e   :  { %909 = vmatprep.mubr.msk.f32.mxu0 %vm1124_vm2, %v1125_v6 }
  0x71   :  { %910 = vmatmul.mubr.msk.f32.gmra.mrb[22].mxu0 %vm142_vm0, %v62_v7 }
  0x72   :  { %912 = vmatprep.mubr.msk.f32.mxu0 %vm1124_vm2, %v1125_v6 }
  0x75   :  { %913 = vmatmul.mubr.msk.f32.gmra.mrb[24].mxu0 %vm142_vm0, %v63_v8 }
  0x87   :  { %v80_v9 = vpop.permute.xlu0 %79  ;;  %v90_v17 = vpop.permute.xlu1 %89 }
  0x8b   :  { %v85_v13 = vpop.permute.xlu0 %84  ;;  %v95_v21 = vpop.permute.xlu1 %94 }
  0x8f   :  { %v100_v28 = vpop.permute.xlu0 %99  ;;  %v105_v32 = vpop.permute.xlu1 %104 }
  0x96   :  { %v110_v39 = vpop.permute.xlu0 %109 }
  0x98   :  { %v115_v43 = vpop.permute.xlu1 %114 }
  0x9a   :  { %v120_v50 = vpop.permute.xlu0 %119 }
  0x9c   :  { %v125_v54 = vpop.permute.xlu1 %124 }
  0x9e   :  { %v130_v61 = vpop.permute.xlu0 %129 }
  0xa0   :  { %v135_v1 = vpop.permute.xlu1 %134 }
  0xa2   :  { %v140_v8 = vpop.permute.xlu0 %139 }
 0x118   :  { %v296_v10 = vpop.f32.mrb[0].mxu0 }
 0x119   :  { %v878_v11 = vpop.f32.mrb[1].mxu0  ;;  %v297_v12 = vadd.f32 %v296_v10, %v80_v9 }
 0x11b   :  { %1051 = vtanh.f32 %v297_v12 }
 0x11c   :  { %v301_v14 = vpop.f32.mrb[2].mxu0 }
 0x11d   :  { %v302_v15 = vadd.f32 %v301_v14, %v85_v13  ;;  %v881_v16 = vpop.f32.mrb[3].mxu0 }
 0x11f   :  { %1053 = vtanh.f32 %v302_v15 }
 0x120   :  { %v306_v18 = vpop.f32.mrb[4].mxu0 }
 0x121   :  { %v884_v19 = vpop.f32.mrb[5].mxu0  ;;  %v307_v20 = vadd.f32 %v306_v18, %v90_v17  ;;  %v373_v17 = vld [vmem:[%s1501_s3] sm:$0xff] }
 0x122   :  { %v375_v19 = vld [vmem:[%s1501_s3 + $0x10] sm:$0xff] }
 0x123   :  { %1055 = vtanh.f32 %v307_v20  ;;  %v376_v20 = vld [vmem:[%s1501_s3 + $0x18] sm:$0xff] }
 0x124   :  { %v311_v22 = vpop.f32.mrb[6].mxu0 }
 0x125   :  { %v312_v23 = vadd.f32 %v311_v22, %v95_v21  ;;  %v887_v24 = vpop.f32.mrb[7].mxu0  ;;  %v1052_v25 = vpop.eup %1051  ;;  %v377_v21 = vld [vmem:[%s1501_s3 + $0x20] sm:$0xff]  ;;  %v378_v22 = vld [vmem:[%s1501_s3 + $0x28] sm:$0xff] }
 0x126   :  { %v551_v24 = vld [vmem:[%s1503_s5] sm:$0xff] }
 0x127   :  { %1057 = vtanh.f32 %v312_v23  ;;  %v379_v23 = vld [vmem:[%s1501_s3 + $0x30] sm:$0xff] }
 0x128   :  { %v316_v26 = vpop.f32.mrb[8].mxu0 }
 0x129   :  { %v1054_v27 = vpop.eup %1053  ;;  %v890_v29 = vpop.f32.mrb[9].mxu0  ;;  %v317_v30 = vadd.f32 %v316_v26, %v100_v28 }
 0x12a   :  { %v1015_v31 = vpack.c.bf16 %v1054_v27, %v1052_v25  ;;  %v390_v26 = vpop.permute.xlu1 %389  ;;  %v395_v29 = vpop.permute.xlu0 %394 }
 0x12b   :  { %1059 = vtanh.f32 %v317_v30 }
 0x12c   :  { %v321_v33 = vpop.f32.mrb[10].mxu0  ;;  %1016 = vmatpush3.bf16.msra.mxu1 %v1015_v31 }
 0x12d   :  { %v322_v34 = vadd.f32 %v321_v33, %v105_v32  ;;  %v893_v35 = vpop.f32.mrb[11].mxu0  ;;  %1017 = vmatprep.subr.bf16.mxu1 %v1123_v3  ;;  %v1056_v36 = vpop.eup %1055 }
 0x12e   :  { %v400_v33 = vpop.permute.xlu1 %399 }
 0x12f   :  { %1061 = vtanh.f32 %v322_v34 }
 0x130   :  { %v326_v37 = vpop.f32.mrb[12].mxu0 }
 0x131   :  { %v1058_v38 = vpop.eup %1057  ;;  %v896_v40 = vpop.f32.mrb[13].mxu0  ;;  %v327_v41 = vadd.f32 %v326_v37, %v110_v39 }
 0x132   :  { %v1018_v42 = vpack.c.bf16 %v1058_v38, %v1056_v36  ;;  %v405_v36 = vpop.permute.xlu0 %404 }
 0x133   :  { %1063 = vtanh.f32 %v327_v41 }
 0x134   :  { %v331_v44 = vpop.f32.mrb[14].mxu0  ;;  %1019 = vmatpush3.bf16.msra.mxu1 %v1018_v42 }
 0x135   :  { %v332_v45 = vadd.f32 %v331_v44, %v115_v43  ;;  %v899_v46 = vpop.f32.mrb[15].mxu0  ;;  %1020 = vmatprep.subr.bf16.mxu1 %v1123_v3  ;;  %v1060_v47 = vpop.eup %1059 }
 0x136   :  { %v410_v43 = vpop.permute.xlu1 %409 }
 0x137   :  { %1065 = vtanh.f32 %v332_v45 }
 0x138   :  { %v336_v48 = vpop.f32.mrb[16].mxu0 }
 0x139   :  { %v1062_v49 = vpop.eup %1061  ;;  %v902_v51 = vpop.f32.mrb[17].mxu0  ;;  %v337_v52 = vadd.f32 %v336_v48, %v120_v50 }
 0x13a   :  { %v1021_v53 = vpack.c.bf16 %v1062_v49, %v1060_v47  ;;  %v415_v47 = vpop.permute.xlu0 %414 }
 0x13b   :  { %1067 = vtanh.f32 %v337_v52  ;;  %v420_v52 = vpop.permute.xlu1 %419 }
 0x13c   :  { %v341_v55 = vpop.f32.mrb[18].mxu0  ;;  %1022 = vmatpush3.bf16.msra.mxu1 %v1021_v53 }
 0x13d   :  { %v342_v56 = vadd.f32 %v341_v55, %v125_v54  ;;  %v905_v57 = vpop.f32.mrb[19].mxu0  ;;  %1023 = vmatprep.subr.bf16.mxu1 %v1123_v3  ;;  %v1064_v58 = vpop.eup %1063 }
 0x13f   :  { %1069 = vtanh.f32 %v342_v56 }
 0x140   :  { %v346_v59 = vpop.f32.mrb[20].mxu0 }
 0x141   :  { %v1066_v60 = vpop.eup %1065  ;;  %v908_v62 = vpop.f32.mrb[21].mxu0  ;;  %v347_v63 = vadd.f32 %v346_v59, %v130_v61 }
 0x142   :  { %v1024_v0 = vpack.c.bf16 %v1066_v60, %v1064_v58  ;;  %v552_v62 = vld [vmem:[%s1503_s5 + $0x8] sm:$0xff] }
 0x143   :  { %1071 = vtanh.f32 %v347_v63  ;;  %v553_v63 = vld [vmem:[%s1503_s5 + $0x10] sm:$0xff] }
 0x144   :  { %v351_v2 = vpop.f32.mrb[22].mxu0  ;;  %1025 = vmatpush3.bf16.msra.mxu1 %v1024_v0  ;;  %v554_v0 = vld [vmem:[%s1503_s5 + $0x18] sm:$0xff]  ;;  %s1127_s5 = smov [#allocation3]  }
 0x145   :  { %v352_v4 = vadd.f32 %v351_v2, %v135_v1  ;;  %v911_v5 = vpop.f32.mrb[23].mxu0  ;;  %1026 = vmatprep.subr.bf16.mxu1 %v1123_v3  ;;  %v1068_v7 = vpop.eup %1067  ;;  %s736_s21 = sshll.u32 %s1127_s5, 4  ;;  %s737_s21 = int_to_ptr.vmem [resolvable:$true] %s736_s21 }
 0x146   :  { %v567_v1 = vpop.permute.xlu1 %566  ;;  %v562_v2 = vpop.permute.xlu0 %561  ;;  %s1099_s22 = scalar_lea.vmem %s737_s21, 16  ;;  %s1103_s23 = scalar_lea.vmem %s737_s21, 32 }
 0x147   :  { %1073 = vtanh.f32 %v352_v4  ;;  %p1100_p0 = scmp.ne.s32.totalorder %s737_s21, %s1099_s22  ;;  %p1104_p1 = scmp.lt.s32.totalorder %s737_s21, %s737_s21 }
 0x148   :  { %v356_v9 = vpop.f32.mrb[24].mxu0  ;;  %p1105_p2 = scmp.lt.s32.totalorder %s1103_s23, %s1099_s22 }
 0x149   :  { %v1070_v10 = vpop.eup %1069  ;;  %v357_v11 = vadd.f32 %v356_v9, %v140_v8  ;;  %v914_v12 = vpop.f32.mrb[25].mxu0 }
 0x14a   :  { %v1027_v13 = vpack.c.bf16 %v1070_v10, %v1068_v7  ;;  %v577_v9 = vpop.permute.xlu1 %576  ;;  %p1106_p3 = por %p1105_p2, %p1104_p1 }
 0x14b   :  { %1075 = vtanh.f32 %v357_v11  ;;  %v572_v11 = vpop.permute.xlu0 %571 }
 0x14c   :  { %1028 = vmatpush3.bf16.msra.mxu1 %v1027_v13  ;;  %p1107_p4 = pnand %p1106_p3, %p1100_p0 }
 0x14d   :  { %1029 = vmatprep.subr.bf16.mxu1 %v1123_v3  ;;  %v1072_v14 = vpop.eup %1071  ;;  %v374_v3 = vld [vmem:[%s1501_s3 + $0x8] sm:$0xff] }
 0x151   :  { %v1074_v15 = vpop.eup %1073 }
 0x152   :  { %v1030_v16 = vpack.c.bf16 %v1074_v15, %v1072_v14  ;;  %v688_v15 = vpop.permute.xlu0 %687 }
 0x154   :  { %1031 = vmatpush3.bf16.msra.mxu1 %v1030_v16 }
 0x155   :  { %939 = vmatprep.subr.mxu1 %v1125_v6  ;;  %v1076_v18 = vpop.eup %1075 }
 0x158   :  { %940 = vmatpush3.msra.mxu1 %v1076_v18 }
 0x159   :  { %942 = vmatmul.mubr.msk.f32.vlgmr.msra.gmra.mrb[0].mxu1 %vm422_vm3, %v373_v17  ;;  %v693_v17 = vpop.permute.xlu1 %692 }
 0x15a   :  { %944 = vmatprep.mubr.msk.f32.mxu1 %vm1124_vm2, %v1125_v6 }
 0x15d   :  { %945 = vmatmul.mubr.msk.f32.gmra.mrb[2].mxu1 %vm422_vm3, %v374_v3 }
 0x15e   :  { %947 = vmatprep.mubr.msk.f32.mxu1 %vm1124_vm2, %v1125_v6 }
 0x161   :  { %948 = vmatmul.mubr.msk.f32.gmra.mrb[4].mxu1 %vm422_vm3, %v375_v19 }
 0x162   :  { %950 = vmatprep.mubr.msk.f32.mxu1 %vm1124_vm2, %v1125_v6 }
 0x165   :  { %951 = vmatmul.mubr.msk.f32.gmra.mrb[6].mxu1 %vm422_vm3, %v376_v20 }
 0x166   :  { %953 = vmatprep.mubr.msk.f32.mxu1 %vm1124_vm2, %v1125_v6 }
 0x169   :  { %954 = vmatmul.mubr.msk.f32.gmra.mrb[8].mxu1 %vm422_vm3, %v377_v21 }
 0x16a   :  { %956 = vmatprep.mubr.msk.f32.mxu1 %vm1124_vm2, %v1125_v6 }
 0x16d   :  { %957 = vmatmul.mubr.msk.f32.gmra.mrb[10].mxu1 %vm422_vm3, %v378_v22 }
 0x16e   :  { %959 = vmatprep.mubr.msk.f32.mxu1 %vm1124_vm2, %v1125_v6 }
 0x171   :  { %960 = vmatmul.mubr.msk.f32.gmra.mrb[12].mxu1 %vm422_vm3, %v379_v23  ;;  %v698_v23 = vpop.permute.xlu0 %697 }
 0x172   :  { %976 = vmatprep.mubr.msk.f32.mxu1 %vm579_vm4, %v551_v24 }
 0x22c   :  { %v510_v25 = vpop.f32.mrb[0].mxu1 }
 0x22d   :  { %v943_v27 = vpop.f32.mrb[1].mxu1  ;;  %v511_v28 = vadd.f32 %v510_v25, %v390_v26  ;;  %v703_v25 = vpop.permute.xlu1 %702 }
 0x22f   :  { %1077 = vtanh.f32 %v511_v28  ;;  %v724_v28 = vlaneseq }
 0x230   :  { %v515_v30 = vpop.f32.mrb[2].mxu1 }
 0x231   :  { %v516_v6 = vadd.f32 %v515_v30, %v395_v29  ;;  %v946_v31 = vpop.f32.mrb[3].mxu1 }
 0x233   :  { %1079 = vtanh.f32 %v516_v6  ;;  %v725_v6 = vshrl.u32 %v724_v28, 7 }
 0x234   :  { %v520_v32 = vpop.f32.mrb[4].mxu1 }
 0x235   :  { %v949_v34 = vpop.f32.mrb[5].mxu1  ;;  %v521_v35 = vadd.f32 %v520_v32, %v400_v33  ;;  %v726_v33 = vsub.s32 0, %v725_v6 }
 0x237   :  { %1081 = vtanh.f32 %v521_v35  ;;  %v722_v35 = vpop.permute.xlu0 %721 }
 0x238   :  { %v525_v37 = vpop.f32.mrb[6].mxu1 }
 0x239   :  { %v526_v38 = vadd.f32 %v525_v37, %v405_v36  ;;  %v952_v39 = vpop.f32.mrb[7].mxu1  ;;  %v1078_v40 = vpop.eup %1077  ;;  %v727_v37 = vrot.slane %v722_v35, %v726_v33 }
 0x23b   :  { %1083 = vtanh.f32 %v526_v38 }
 0x23c   :  { %v530_v41 = vpop.f32.mrb[8].mxu1 }
 0x23d   :  { %v1080_v42 = vpop.eup %1079  ;;  %v955_v44 = vpop.f32.mrb[9].mxu1  ;;  %v531_v45 = vadd.f32 %v530_v41, %v410_v43 }
 0x23e   :  { %v1032_v46 = vpack.c.bf16 %v1080_v42, %v1078_v40 }
 0x23f   :  { %1085 = vtanh.f32 %v531_v45 }
 0x240   :  { %v535_v48 = vpop.f32.mrb[10].mxu1  ;;  %1033 = vmatprep.subr.bf16.mxu1 %v1032_v46 }
 0x241   :  { %v536_v49 = vadd.f32 %v535_v48, %v415_v47  ;;  %v958_v50 = vpop.f32.mrb[11].mxu1  ;;  %1035 = vmatpush3.bf16.msra.mxu1 %v1032_v46  ;;  %v1082_v51 = vpop.eup %1081 }
 0x243   :  { %1087 = vtanh.f32 %v536_v49 }
 0x244   :  { %v540_v53 = vpop.f32.mrb[12].mxu1 }
 0x245   :  { %v1084_v54 = vpop.eup %1083  ;;  %v541_v55 = vadd.f32 %v540_v53, %v420_v52  ;;  %v961_v56 = vpop.f32.mrb[13].mxu1 }
 0x246   :  { %v1036_v57 = vpack.c.bf16 %v1084_v54, %v1082_v51 }
 0x247   :  { %1089 = vtanh.f32 %v541_v55 }
 0x248   :  { %1037 = vmatprep.subr.bf16.mxu1 %v1036_v57 }
 0x249   :  { %1039 = vmatpush3.bf16.msra.mxu1 %v1036_v57  ;;  %v1086_v58 = vpop.eup %1085 }
 0x24d   :  { %v1088_v59 = vpop.eup %1087 }
 0x24e   :  { %v1040_v60 = vpack.c.bf16 %v1088_v59, %v1086_v58 }
 0x250   :  { %1041 = vmatprep.subr.bf16.mxu1 %v1040_v60 }
 0x251   :  { %v1090_v61 = vpop.eup %1089  ;;  %1043 = vmatpush3.bf16.msra.mxu1 %v1040_v60 }
 0x252   :  { %974 = vmatprep.subr.mxu1 %v1090_v61 }
 0x255   :  { %975 = vmatpush3.msra.mxu1 %v1090_v61 }
 0x256   :  { %977 = vmatmul.mubr.msk.f32.vlgmr.msra.gmra.mrb[14].mxu1 %vm579_vm4, %v552_v62 }
 0x257   :  { %979 = vmatprep.mubr.msk.f32.mxu1 %vm579_vm4, %v553_v63 }
 0x25a   :  { %980 = vmatmul.mubr.msk.f32.gmra.mrb[16].mxu1 %vm579_vm4, %v554_v0 }
 0x329   :  { %v978_v4 = vpop.f32.mrb[14].mxu1 }
 0x32a   :  { %v664_v5 = vadd.f32 %v978_v4, %v567_v1  ;;  %v658_v7 = vpop.f32.mrb[15].mxu1 }
 0x32b   :  { %v659_v8 = vadd.f32 %v658_v7, %v562_v2 }
 0x32c   :  { %1091 = vtanh.f32 %v664_v5 }
 0x32d   :  { %1093 = vtanh.f32 %v659_v8  ;;  %v981_v10 = vpop.f32.mrb[16].mxu1 }
 0x32e   :  { %v674_v12 = vadd.f32 %v981_v10, %v577_v9  ;;  %v668_v13 = vpop.f32.mrb[17].mxu1 }
 0x32f   :  { %v669_v14 = vadd.f32 %v668_v13, %v572_v11 }
 0x330   :  { %1095 = vtanh.f32 %v674_v12 }
 0x331   :  { %1097 = vtanh.f32 %v669_v14 }
 0x336   :  { %v1092_v16 = vpop.eup %1091 }
 0x337   :  { %v1094_v18 = vpop.eup %1093  ;;  %v706_v3 = vmul.f32 %v1092_v16, %v693_v17 }
 0x338   :  { %v705_v19 = vmul.f32 %v1094_v18, %v688_v15 }
 0x33a   :  { %v1096_v20 = vpop.eup %1095  ;;  %v709_v21 = vadd.f32 %v706_v3, %v705_v19 }
 0x33b   :  { %v1098_v22 = vpop.eup %1097  ;;  %v708_v26 = vmul.f32 %v1096_v20, %v703_v25 }
 0x33c   :  { %v707_v24 = vmul.f32 %v1098_v22, %v698_v23 }
 0x33e   :  { %v710_v27 = vadd.f32 %v709_v21, %v707_v24 }
 0x340   :  { %v711_v29 = vadd.f32 %v710_v27, %v708_v26 }
 0x342   :  { %v712_v30 = vrot.slane %v711_v29, 4 }
 0x344   :  { %v713_v31 = vadd.f32 %v712_v30, %v711_v29 }
 0x346   :  { %v714_v32 = vrot.slane %v713_v31, 2 }
 0x348   :  { %v715_v34 = vadd.f32 %v714_v32, %v713_v31 }
 0x34a   :  { %v716_v36 = vrot.slane %v715_v34, 1 }
 0x34c   :  { %v717_v38 = vadd.f32 %v716_v36, %v715_v34 }
 0x34e   :  { %v728_v39 = vadd.f32 %v727_v37, %v717_v38 }
 0x350   :  { %729 = vst [vmem:[#allocation3] sm:$0x1] %v728_v39 }
 0x351   :  { %1110 = shalt.err (!%p1107_p4)
}
 0x352   :  { %s1111_s25 = scalar_lea.hbm %s1507_s9, 16 }
 0x353   :  { %p1112_p5 = scmp.ne.s32.totalorder %s1507_s9, %s1111_s25  ;;  %p1115_p6 = scmp.lt.u32.totalorder %s1111_s25, %s1507_s9 }
 0x355   :  { %p1117_p7 = pnand %p1115_p6, %p1112_p5 }
 0x357   :  { %1120 = shalt.err (!%p1117_p7)
}
 0x358   :  { %739 = dma.vmem_to_hbm [thread:$0]  %s737_s21, 16, %s1507_s9, [#allocation4]  }
 0x359   :  { %1121 = dma.done.wait [#allocation4], 16  }
 0x35a   :  { %1122 = vsyncadd [#allocation4], 4294967280 }
 0x35b   :  { %743 = vsyncpa [#allocation4], 1 }

</bundles_post_ra>
